<compile_context>
chip_gen: v6e
topology: v6e:2x2x1
jax: 0.10.0
libtpu: 0.0.40
codegen_flags: <defaults>
</compile_context>

<pallas_src>
import functools

import jax
import jax.numpy as jnp
from jax import lax
from jax.experimental import pallas as pl
from jax.experimental.pallas import tpu as pltpu

SOFTEN = 160.0
LANES = 128              # TPU vreg lane width
PAIR_LANES = 2 * LANES   # one interleaved (upp, low) row = 256 lanes
BLOCK_ROWS_MAX = 1024    # 2 inputs x 2 buffers x 1024 x 256 x 4B = 4 MiB VMEM


def _cdiv(a, b):
    return (a + b - 1) // b


def _picp_kernel(preds_ref, tgt_ref, out_ref, acc_ref, *,
                 block_rows, tiles_per_split, n_valid, needs_mask):
    s = pl.program_id(0)   # split index ("parallel" -> one per TensorCore)
    i = pl.program_id(1)   # row-tile index within the split ("arbitrary")

    @pl.when(i == 0)
    def _init():
        acc_ref[...] = jnp.zeros_like(acc_ref)

    # preds tile: lane 2j = upp_j, lane 2j+1 = low_j   (natural (N, 2) layout)
    # tgt tile:   lane 2j = lane 2j+1 = target_j
    p = preds_ref[...].astype(jnp.float32)
    t = tgt_ref[...].astype(jnp.float32)

    lane = lax.broadcasted_iota(jnp.int32, (1, PAIR_LANES), 1)
    is_upp = (lane & 1) == 0
    # arg = +SOFTEN*(upp - t) on upp lanes, +SOFTEN*(t - low) on low lanes
    coef = jnp.where(is_upp, jnp.float32(SOFTEN), jnp.float32(-SOFTEN))

    # sigmoid(arg) = 1 / (1 + exp(-arg));  d = 1 + exp(-arg)
    d = 1.0 + jnp.exp(coef * (t - p))

    # Pair every lane with its interleave partner (lane ^ 1) via a one-lane
    # roll.  The pair mask is derived with the *same* roll, so the selected
    # lanes are correct for either rotation direction of the hardware op and
    # each (upp, low) pair is counted exactly once.
    d_partner = pltpu.roll(d, 1, axis=1)
    partner_lane = pltpu.roll(lane.astype(jnp.float32), 1, axis=1)
    pair_mask = partner_lane == (lane ^ 1).astype(jnp.float32)

    # k = K_SU * K_SL = 1 / ((1 + e^-a) * (1 + e^-b))  -- single EUP reciprocal
    k = pl.reciprocal(d * d_partner, approx=False)

    if needs_mask:
        # Mask grid / 128-lane padding against the true element count.
        row = lax.broadcasted_iota(jnp.int32, (block_rows, PAIR_LANES), 0)
        lane_full = lax.broadcasted_iota(jnp.int32, (block_rows, PAIR_LANES), 1)
        row_start = (s * tiles_per_split + i) * block_rows
        elem = (row_start + row) * LANES + (lane_full >> 1)
        mask = pair_mask & (elem < n_valid)
    else:
        mask = pair_mask
    k = jnp.where(mask, k, jnp.float32(0.0))

    # Lane-wide partial sums: plain VPU adds into the (8, 256) accumulator.
    # The single cross-lane reduction happens once, outside the kernel.
    acc_ref[...] += jnp.sum(k.reshape(block_rows // 8, 8, PAIR_LANES), axis=0)

    @pl.when(i == tiles_per_split - 1)
    def _finalize():
        out_ref[...] = acc_ref[...]


def picp_alpha_loss(preds, target, *, block_rows_max=BLOCK_ROWS_MAX):
    """preds: (N, 2) [upp, low]; target: (N, 1). Returns scalar f32 loss."""
    n = preds.shape[0]
    assert preds.ndim == 2 and preds.shape[1] == 2
    assert target.shape[0] == n
    target = target.reshape(n, -1)[:, :1]

    # Pad to a whole number of 128-lane rows (and at least 8 rows); padded
    # elements are masked in-kernel against the true n.
    n_pad = max(_cdiv(n, LANES) * LANES, 8 * LANES)
    if n_pad != n:
        preds = jnp.pad(preds, ((0, n_pad - n), (0, 0)))
        target = jnp.pad(target, ((0, n_pad - n), (0, 0)))
    rows = n_pad // LANES

    # preds: free contiguous reshape -> (rows, 256), lanes interleaved (u, l).
    preds2 = preds.reshape(rows, PAIR_LANES)
    # target: one small duplicate so t_j lines up under both of its preds lanes.
    # TODO(synk): a (2, N) producer layout (or an exact in-kernel lane
    # interleave primitive) would remove this remaining wrapper copy as well.
    tgt2 = jnp.concatenate([target, target], axis=1).reshape(rows, PAIR_LANES)

    block_rows = min(block_rows_max, (rows // 8) * 8)
    tiles = _cdiv(rows, block_rows)
    num_splits = 2 if tiles >= 2 else 1          # dual-TensorCore split (v7x)
    tiles_per_split = _cdiv(tiles, num_splits)
    needs_mask = (num_splits * tiles_per_split * block_rows * LANES) != n

    kernel = functools.partial(
        _picp_kernel,
        block_rows=block_rows,
        tiles_per_split=tiles_per_split,
        n_valid=n,
        needs_mask=needs_mask,
    )

    def row_block(s, i):
        # A split may overhang the last tile; the overhang is masked to zero,
        # so clamp the block index into range.
        return (jnp.minimum(s * tiles_per_split + i, tiles - 1), 0)

    partials = pl.pallas_call(
        kernel,
        out_shape=jax.ShapeDtypeStruct((num_splits * 8, PAIR_LANES), jnp.float32),
        grid=(num_splits, tiles_per_split),
        in_specs=[
            pl.BlockSpec((block_rows, PAIR_LANES), row_block),
            pl.BlockSpec((block_rows, PAIR_LANES), row_block),
        ],
        out_specs=pl.BlockSpec((8, PAIR_LANES), lambda s, i: (s, 0)),
        scratch_shapes=[pltpu.VMEM((8, PAIR_LANES), jnp.float32)],
        compiler_params=pltpu.CompilerParams(
            dimension_semantics=("parallel", "arbitrary")),
        cost_estimate=pl.CostEstimate(
            flops=20 * n, transcendentals=4 * n, bytes_accessed=16 * n),
    )(preds2, tgt2)

    return jnp.float32(1.0) - jnp.sum(partials) / jnp.float32(n)


def picp_alpha_loss_ref(preds, target):
    upp = preds[:, 0]
    low = preds[:, 1]
    tgt = target[:, 0]
    k_su = jax.nn.sigmoid(SOFTEN * (upp - tgt))
    k_sl = jax.nn.sigmoid(SOFTEN * (tgt - low))
    return 1.0 - jnp.mean(k_su * k_sl)


if __name__ == "__main__":
    root = jax.random.PRNGKey(0)

    def check(n):
        k1, k2 = jax.random.split(jax.random.fold_in(root, n))
        preds = jax.random.normal(k1, (n, 2), dtype=jnp.float32)
        target = jax.random.normal(k2, (n, 1), dtype=jnp.float32)
        loss = jax.jit(picp_alpha_loss)(preds, target)
        jax.block_until_ready(loss)
        ref = picp_alpha_loss_ref(preds, target)
        assert jnp.allclose(loss, ref, atol=1e-5, rtol=1e-5), (n, loss, ref)

    check(256)       # small primary case (batch of 256 prediction intervals)
    check(1000)      # not a multiple of 128 -> padding + tail masking
    check(524288)    # exact dual-split coverage -> unmasked fast path
    check(655367)    # multi-tile pipeline + 2-way split + ragged tail + clamp
    print("KERNEL_OK")
</pallas_src>

<mosaic_0001>
module attributes {stable_mosaic.version = 11 : i64} {
  func.func @_picp_kernel(%arg0: i32, %arg1: i32, %arg2: memref<8x256xf32, #tpu.memory_space<vmem>>, %arg3: memref<8x256xf32, #tpu.memory_space<vmem>>, %arg4: memref<8x256xf32, #tpu.memory_space<vmem>>, %arg5: memref<8x256xf32, #tpu.memory_space<vmem>>) attributes {dimension_semantics = [#tpu.dimension_semantics<parallel>, #tpu.dimension_semantics<arbitrary>], iteration_bounds = array<i64: 1, 1>, scalar_prefetch = 0 : i64, scratch_operands = 1 : i64, tpu.core_type = #tpu.core_type<tc>, window_params = [{transform_indices = @transform_0, window_bounds = array<i64: 8, 256>}, {transform_indices = @transform_1, window_bounds = array<i64: 8, 256>}, {transform_indices = @transform_2, window_bounds = array<i64: 8, 256>}]} {
    %c0_i32 = arith.constant 0 : i32
    %0 = arith.cmpi eq, %arg1, %c0_i32 : i32
    %1 = arith.extui %0 : i1 to i32
    %c0_i32_0 = arith.constant 0 : i32
    %2 = arith.cmpi ne, %1, %c0_i32_0 : i32
    scf.if %2 {
      %cst_20 = arith.constant 0.000000e+00 : f32
      %54 = vector.broadcast %cst_20 : f32 to vector<8x256xf32>
      %c0_21 = arith.constant 0 : index
      %c0_22 = arith.constant 0 : index
      %55 = vector.load %arg5[%c0_21, %c0_22] : memref<8x256xf32, #tpu.memory_space<vmem>>, vector<8x256xf32>
      tpu.vector_store %arg5[%c0_21, %c0_22], %54 {strides = array<i32>} : memref<8x256xf32, #tpu.memory_space<vmem>>, vector<8x256xf32>,
    } else {
    }
    %c0 = arith.constant 0 : index
    %c0_1 = arith.constant 0 : index
    %3 = vector.load %arg2[%c0, %c0_1] : memref<8x256xf32, #tpu.memory_space<vmem>>, vector<8x256xf32>
    %c0_2 = arith.constant 0 : index
    %c0_3 = arith.constant 0 : index
    %4 = vector.load %arg3[%c0_2, %c0_3] : memref<8x256xf32, #tpu.memory_space<vmem>>, vector<8x256xf32>
    %5 = tpu.iota {dimensions = array<i32: 1>} : vector<1x256xi32>
    %c1_i32 = arith.constant 1 : i32
    %6 = vector.broadcast %c1_i32 : i32 to vector<1x256xi32>
    %7 = arith.andi %5, %6 : vector<1x256xi32>
    %c0_i32_4 = arith.constant 0 : i32
    %8 = vector.broadcast %c0_i32_4 : i32 to vector<1x256xi32>
    %9 = arith.cmpi eq, %7, %8 : vector<1x256xi32>
    %cst = arith.constant 1.600000e+02 : f32
    %cst_5 = arith.constant -1.600000e+02 : f32
    %10 = vector.broadcast %cst : f32 to vector<1x256xf32>
    %11 = vector.broadcast %cst_5 : f32 to vector<1x256xf32>
    %12 = arith.select %9, %10, %11 : vector<1x256xi1>, vector<1x256xf32>
    %13 = arith.subf %4, %3 : vector<8x256xf32>
    %14 = vector.broadcast %12 : vector<1x256xf32> to vector<8x256xf32>
    %15 = arith.mulf %14, %13 : vector<8x256xf32>
    %16 = math.exp %15 : vector<8x256xf32>
    %cst_6 = arith.constant 1.000000e+00 : f32
    %17 = vector.broadcast %cst_6 : f32 to vector<8x256xf32>
    %18 = arith.addf %17, %16 : vector<8x256xf32>
    %c1_i32_7 = arith.constant 1 : i32
    %19 = tpu.dynamic_rotate %18 by %c1_i32_7 dim 1 : vector<8x256xf32>, i32 -> vector<8x256xf32>
    %20 = arith.sitofp %5 : vector<1x256xi32> to vector<1x256xf32>
    %c1_i32_8 = arith.constant 1 : i32
    %21 = tpu.dynamic_rotate %20 by %c1_i32_8 dim 1 : vector<1x256xf32>, i32 -> vector<1x256xf32>
    %c1_i32_9 = arith.constant 1 : i32
    %22 = vector.broadcast %c1_i32_9 : i32 to vector<1x256xi32>
    %23 = arith.xori %5, %22 : vector<1x256xi32>
    %24 = arith.sitofp %23 : vector<1x256xi32> to vector<1x256xf32>
    %25 = arith.cmpf oeq, %21, %24 : vector<1x256xf32>
    %26 = arith.mulf %18, %19 : vector<8x256xf32>
    %27 = tpu.reciprocal %26 : vector<8x256xf32> -> vector<8x256xf32>
    %28 = tpu.iota {dimensions = array<i32: 0>} : vector<8x256xi32>
    %29 = tpu.iota {dimensions = array<i32: 1>} : vector<8x256xi32>
    %c1_i32_10 = arith.constant 1 : i32
    %30 = arith.muli %arg0, %c1_i32_10 : i32
    %31 = arith.addi %30, %arg1 : i32
    %c8_i32 = arith.constant 8 : i32
    %32 = arith.muli %31, %c8_i32 : i32
    %33 = vector.broadcast %32 : i32 to vector<8x256xi32>
    %34 = arith.addi %33, %28 : vector<8x256xi32>
    %c128_i32 = arith.constant 128 : i32
    %35 = vector.broadcast %c128_i32 : i32 to vector<8x256xi32>
    %36 = arith.muli %34, %35 : vector<8x256xi32>
    %c1_i32_11 = arith.constant 1 : i32
    %37 = vector.broadcast %c1_i32_11 : i32 to vector<8x256xi32>
    %38 = arith.shrsi %29, %37 : vector<8x256xi32>
    %39 = arith.addi %36, %38 : vector<8x256xi32>
    %c256_i32 = arith.constant 256 : i32
    %40 = vector.broadcast %c256_i32 : i32 to vector<8x256xi32>
    %41 = arith.cmpi slt, %39, %40 : vector<8x256xi32>
    %42 = vector.broadcast %25 : vector<1x256xi1> to vector<8x256xi1>
    %43 = arith.andi %42, %41 : vector<8x256xi1>
    %cst_12 = arith.constant 0.000000e+00 : f32
    %44 = vector.broadcast %cst_12 : f32 to vector<8x256xf32>
    %45 = arith.select %43, %27, %44 : vector<8x256xi1>, vector<8x256xf32>
    %c0_13 = arith.constant 0 : index
    %c0_14 = arith.constant 0 : index
    %46 = vector.load %arg5[%c0_13, %c0_14] : memref<8x256xf32, #tpu.memory_space<vmem>>, vector<8x256xf32>
    %47 = vector.shape_cast %45 : vector<8x256xf32> to vector<1x8x256xf32>
    %cst_15 = arith.constant dense<0.000000e+00> : vector<8x256xf32>
    %48 = vector.multi_reduction <add>, %47, %cst_15 [0] : vector<1x8x256xf32> to vector<8x256xf32>
    %49 = arith.addf %46, %48 : vector<8x256xf32>
    %c0_16 = arith.constant 0 : index
    %c0_17 = arith.constant 0 : index
    %50 = vector.load %arg5[%c0_16, %c0_17] : memref<8x256xf32, #tpu.memory_space<vmem>>, vector<8x256xf32>
    tpu.vector_store %arg5[%c0_16, %c0_17], %49 {strides = array<i32>} : memref<8x256xf32, #tpu.memory_space<vmem>>, vector<8x256xf32>,
    %c0_i32_18 = arith.constant 0 : i32
    %51 = arith.cmpi eq, %arg1, %c0_i32_18 : i32
    %52 = arith.extui %51 : i1 to i32
    %c0_i32_19 = arith.constant 0 : i32
    %53 = arith.cmpi ne, %52, %c0_i32_19 : i32
    scf.if %53 {
      %c0_20 = arith.constant 0 : index
      %c0_21 = arith.constant 0 : index
      %54 = vector.load %arg5[%c0_20, %c0_21] : memref<8x256xf32, #tpu.memory_space<vmem>>, vector<8x256xf32>
      %c0_22 = arith.constant 0 : index
      %c0_23 = arith.constant 0 : index
      %55 = vector.load %arg4[%c0_22, %c0_23] : memref<8x256xf32, #tpu.memory_space<vmem>>, vector<8x256xf32>
      tpu.vector_store %arg4[%c0_22, %c0_23], %54 {strides = array<i32>} : memref<8x256xf32, #tpu.memory_space<vmem>>, vector<8x256xf32>,
    } else {
    }
    return
  }
  func.func @transform_0(%arg0: i32, %arg1: i32) -> (i32, i32) {
    %c1_i32 = arith.constant 1 : i32
    %0 = arith.muli %arg0, %c1_i32 : i32
    %1 = arith.addi %0, %arg1 : i32
    %c0_i32 = arith.constant 0 : i32
    %2 = arith.minsi %1, %c0_i32 : i32
    %c0_i32_0 = arith.constant 0 : i32
    %c0_i32_1 = arith.constant 0 : i32
    return %2, %c0_i32_0 : i32, i32
  }
  func.func @transform_1(%arg0: i32, %arg1: i32) -> (i32, i32) {
    %c1_i32 = arith.constant 1 : i32
    %0 = arith.muli %arg0, %c1_i32 : i32
    %1 = arith.addi %0, %arg1 : i32
    %c0_i32 = arith.constant 0 : i32
    %2 = arith.minsi %1, %c0_i32 : i32
    %c0_i32_0 = arith.constant 0 : i32
    %c0_i32_1 = arith.constant 0 : i32
    return %2, %c0_i32_0 : i32, i32
  }
  func.func @transform_2(%arg0: i32, %arg1: i32) -> (i32, i32) {
    %c0_i32 = arith.constant 0 : i32
    %c0_i32_0 = arith.constant 0 : i32
    return %arg0, %c0_i32 : i32, i32
  }
}

</mosaic_0001>

<bundles_post_ra>
// kernel: picp_alpha_loss.1
= control target key start
LH: loop header
LB: loop body
LE: loop exit
PB: predicated region body
PF: predicated region fallthrough
CT: control target
= control target key end

     0   :  { %v81_v0 = vlaneseq  ;;  %s196_s17 = smov 1   ;;  %v197_v13 = vmov -160.0   ;;  %v198_v39 = vmov 0   ;;  %s248_s0 = inlined_call_operand.vmem [shape: f32[8,256], index: 0, kind: input, shape index: {}]   ;;  %s249_s1 = inlined_call_operand.vmem [shape: f32[8,256], index: 1, kind: input, shape index: {}]   ;;  %s250_s2 = inlined_call_operand.vmem [shape: f32[8,256], index: 2, kind: output, shape index: {}]  }
   0x1   :  { %v77_v1 = vld [vmem:[%s248_s0] sm:$0xff]  ;;  %v78_v4 = vld [vmem:[%s248_s0 + $0x8] sm:$0xff] }
   0x2   :  { %v79_v2 = vld [vmem:[%s249_s1] sm:$0xff]  ;;  %v220_v3 = vand.u32 127, %v81_v0  ;;  %v80_v5 = vld [vmem:[%s249_s1 + $0x8] sm:$0xff]  ;;  %v126_v20 = vshrl.u32 %v81_v0, 7 }
   0x3   :  { %v90_v8 = vsub.f32 %v79_v2, %v77_v1  ;;  %v91_v11 = vsub.f32 %v80_v5, %v78_v4 }
   0x4   :  { %v83_v6 = vadd.s32 128, %v220_v3  ;;  %v84_v7 = vand.u32 1, %v220_v3  ;;  %v107_v9 = vcvt.s32.f32 %v220_v3  ;;  %v132_v21 = vshra.s32 %v220_v3, 1 }
   0x5   :  { %v131_v24 = vmul.u32 128, %v126_v20  ;;  %v115_v30 = vxor.u32 1, %v220_v3  ;;  %vm104_vm2 = vcmp.lt.s32.totalorder %v220_v3, 1  ;;  %v142_v35 = vsub.s32 0, %v126_v20 }
   0x6   :  { %v85_v10 = vand.u32 1, %v83_v6  ;;  %vm86_vm0 = vcmp.eq.s32.totalorder %v84_v7, 0  ;;  %109 = vrot.lane.b32.xlu1 %v107_v9, %s196_s17  ;;  %v108_v12 = vcvt.s32.f32 %v83_v6  ;;  %v133_v22 = vshra.s32 %v83_v6, 1 }
   0x7   :  { %v88_v14 = vsel %vm86_vm0, 160.0, %v197_v13  ;;  %v134_v27 = vadd.s32 %v132_v21, %v131_v24  ;;  %v116_v31 = vxor.u32 1, %v83_v6  ;;  %v117_v33 = vcvt.s32.f32 %v115_v30 }
   0x8   :  { %vm87_vm1 = vcmp.eq.s32.totalorder %v85_v10, 0  ;;  %v92_v15 = vmul.f32 %v90_v8, %v88_v14  ;;  %v135_v28 = vadd.s32 %v133_v22, %v131_v24 }
   0x9   :  { %v89_v16 = vsel %vm87_vm1, 160.0, %v197_v13  ;;  %v118_v34 = vcvt.s32.f32 %v116_v31  ;;  %vm136_vm5 = vcmp.lt.s32.totalorder %v134_v27, 256 }
   0xa   :  { %v94_v17 = vmul.f32 1.442695, %v92_v15  ;;  %v93_v18 = vmul.f32 %v91_v11, %v89_v16  ;;  %111 = vrot.lane.b32.xlu1 %v108_v12, %s196_s17  ;;  %vm137_vm6 = vcmp.lt.s32.totalorder %v135_v28, 256 }
   0xc   :  { %188 = vpow2.f32 %v94_v17  ;;  %v96_v19 = vmul.f32 1.442695, %v93_v18 }
   0xe   :  { %190 = vpow2.f32 %v96_v19 }
  0x19   :  { %v189_v23 = vpop.eup %188 }
  0x1a   :  { %v98_v25 = vadd.f32 1.0, %v189_v23 }
  0x1b   :  { %v191_v26 = vpop.eup %190 }
  0x1c   :  { %100 = vrot.lane.b32.xlu0 %v98_v25, %s196_s17  ;;  %v99_v29 = vadd.f32 1.0, %v191_v26 }
  0x20   :  { %102 = vrot.lane.b32.xlu0 %v99_v29, %s196_s17 }
  0x78   :  { %v110_v32 = vpop.permute.xlu1 %109 }
  0x7c   :  { %v112_v36 = vpop.permute.xlu1 %111 }
  0x7d   :  { %v113_v37 = vsel %vm104_vm2, %v110_v32, %v112_v36  ;;  %v114_v38 = vsel %vm104_vm2, %v112_v36, %v110_v32 }
  0x7e   :  { %vm119_vm3 = vcmp.eq.f32.partialorder %v114_v38, %v117_v33  ;;  %vm120_vm4 = vcmp.eq.f32.partialorder %v113_v37, %v118_v34 }
  0x7f   :  { %v138_v40 = vsel %vm119_vm3, 1, %v198_v39  ;;  %v139_v41 = vsel %vm120_vm4, 1, %v198_v39 }
  0x80   :  { %v143_v42 = vrot.slane %v138_v40, %v142_v35  ;;  %v147_v43 = vrot.slane %v139_v41, %v142_v35 }
  0x82   :  { %vm148_vm7 = vcmp.eq.s32.totalorder %v143_v42, 1  ;;  %vm149_vm8 = vcmp.eq.s32.totalorder %v147_v43, 1 }
  0x83   :  { %vm150_vm9 = vmand %vm148_vm7, %vm136_vm5 }
  0x84   :  { %vm151_vm10 = vmand %vm149_vm8, %vm137_vm6 }
  0x8e   :  { %v101_v44 = vpop.permute.xlu0 %100 }
  0x92   :  { %v103_v45 = vpop.permute.xlu0 %102 }
  0x93   :  { %v105_v46 = vsel %vm104_vm2, %v101_v44, %v103_v45  ;;  %v106_v47 = vsel %vm104_vm2, %v103_v45, %v101_v44 }
  0x94   :  { %v121_v48 = vmul.f32 %v106_v47, %v98_v25  ;;  %v122_v49 = vmul.f32 %v105_v46, %v99_v29 }
  0x96   :  { %192 = vrcp.f32 %v121_v48 }
  0x97   :  { %194 = vrcp.f32 %v122_v49 }
  0xa3   :  { %v193_v50 = vpop.eup %192 }
  0xa4   :  { %v195_v51 = vpop.eup %194  ;;  %v152_v52 = vsel %vm150_vm9, %v193_v50, 0.0 }
  0xa5   :  { %v153_v53 = vsel %vm151_vm10, %v195_v51, 0.0  ;;  %167 = vst [vmem:[%s250_s2] sm:$0xff] %v152_v52 }
  0xa6   :  { %168 = vst [vmem:[%s250_s2 + $0x8] sm:$0xff] %v153_v53 }

</bundles_post_ra>
